<compile_context>
chip_gen: v5e
topology: v5e:2x2
jax: 0.10.0
libtpu: 0.0.40
codegen_flags: <defaults>
</compile_context>

<pallas_src>
import jax
import jax.numpy as jnp
from jax import lax
from jax.experimental import pallas as pl
from jax.experimental.pallas import tpu as pltpu

FEATURES = 7
NUM_INPUTS = 17
NUM_LAYERS = 11

LANE = 128      # TPU lane width — pad feature dims to this for unmasked loads/stores
SUBLANE = 8     # f32 sublane tile
TB = 512        # batch tile (rows) once B is large enough to be worth pipelining


def vanilla_kernel(x_ref, w_ref, b_ref, o_ref):
    # Entire model folded to a single MXU pass: (tb,128) @ (128,128) + bias.
    o_ref[...] = (
        jnp.dot(x_ref[...], w_ref[...], preferred_element_type=jnp.float32)
        + b_ref[...]
    )


def init_params(key):
    """Deterministic init mimicking nn.Linear uniform(-1/sqrt(fan_in), 1/sqrt(fan_in))."""
    keys = jax.random.split(key, 2 * NUM_LAYERS + 2)
    in_dim = NUM_INPUTS * FEATURES
    bound = 1.0 / jnp.sqrt(in_dim)
    Ws, bs = [], []
    for l in range(NUM_LAYERS):
        W = jax.random.uniform(keys[2 * l], (FEATURES, in_dim), jnp.float32, -bound, bound)
        b = jax.random.uniform(keys[2 * l + 1], (FEATURES,), jnp.float32, -bound, bound)
        Ws.append(W)
        bs.append(b)
    fin_in = NUM_LAYERS * FEATURES
    fbound = 1.0 / jnp.sqrt(fin_in)
    Wf = jax.random.uniform(keys[-2], (FEATURES, fin_in), jnp.float32, -fbound, fbound)
    bf = jax.random.uniform(keys[-1], (FEATURES,), jnp.float32, -fbound, fbound)
    return Ws, bs, Wf, bf


def _fold_params(Ws, bs, Wf, bf):
    """Fold both weighted-concat scales, the 11 Linears, the selector (sum of
    transformed) and the final Linear into one (119,7) weight + (7,) bias.

        out = t @ (scale2[:,None]*Wf.T - selector) + bf
        t   = (x*scale1) @ W_all + b_all
     => out = x @ W_total + b_total
    Constant matmuls are done once at HIGHEST precision (no hot-path cost).
    """
    hp = lax.Precision.HIGHEST
    scale1 = jnp.repeat(jnp.arange(1, NUM_INPUTS + 1, dtype=jnp.float32), FEATURES)   # (119,)
    scale2 = jnp.repeat(jnp.arange(1, NUM_LAYERS + 1, dtype=jnp.float32), FEATURES)   # (77,)
    W_all = jnp.concatenate([W.T for W in Ws], axis=1)                                # (119, 77)
    b_all = jnp.concatenate(bs)                                                       # (77,)
    selector = jnp.tile(jnp.eye(FEATURES, dtype=jnp.float32), (NUM_LAYERS, 1))        # (77, 7)
    Wf_comb = scale2[:, None] * Wf.T - selector                                       # (77, 7)
    W_total = jnp.dot(scale1[:, None] * W_all, Wf_comb, precision=hp)                 # (119, 7)
    b_total = jnp.dot(b_all, Wf_comb, precision=hp) + bf                              # (7,)
    return W_total, b_total


def vanilla_forward_pallas(inputs, Ws, bs, Wf, bf):
    B = inputs[0].shape[0]
    K = NUM_INPUTS * FEATURES                                                # 119

    # --- glue (plain JAX): constant folding + lane-dense padding -------------
    W_total, b_total = _fold_params(Ws, bs, Wf, bf)
    xcat = jnp.concatenate(inputs, axis=1)                                   # (B, 119)
    x_p = jnp.pad(xcat, ((0, 0), (0, LANE - K)))                             # (B, 128)
    W_p = jnp.pad(W_total, ((0, LANE - K), (0, LANE - FEATURES)))            # (128, 128)
    b_p = jnp.pad(b_total, (0, LANE - FEATURES)).reshape(1, LANE)            # (1, 128)
    # zero padding keeps results exact; extra output columns are sliced off.

    if B <= TB:
        # Small batch: single full-array block in VMEM, no grid / pipelining.
        B_pad = pl.cdiv(B, SUBLANE) * SUBLANE
        if B_pad != B:
            x_p = jnp.pad(x_p, ((0, B_pad - B), (0, 0)))
        out = pl.pallas_call(
            vanilla_kernel,
            out_shape=jax.ShapeDtypeStruct((B_pad, LANE), jnp.float32),
            in_specs=[pl.BlockSpec(memory_space=pltpu.MemorySpace.VMEM)] * 3,
            out_specs=pl.BlockSpec(memory_space=pltpu.MemorySpace.VMEM),
        )(x_p, W_p, b_p)
    else:
        # Large batch: tile the batch axis (parallel -> megacore/dual-TC sharding),
        # weights/bias stay as a single VMEM-resident block.
        B_pad = pl.cdiv(B, TB) * TB
        if B_pad != B:
            x_p = jnp.pad(x_p, ((0, B_pad - B), (0, 0)))
        out = pl.pallas_call(
            vanilla_kernel,
            out_shape=jax.ShapeDtypeStruct((B_pad, LANE), jnp.float32),
            grid=(B_pad // TB,),
            in_specs=[
                pl.BlockSpec((TB, LANE), lambda i: (i, 0)),
                pl.BlockSpec((LANE, LANE), lambda i: (0, 0)),
                pl.BlockSpec((1, LANE), lambda i: (0, 0)),
            ],
            out_specs=pl.BlockSpec((TB, LANE), lambda i: (i, 0)),
            compiler_params=pltpu.CompilerParams(
                dimension_semantics=("parallel",)),
        )(x_p, W_p, b_p)

    return out[:B, :FEATURES]


def vanilla_forward_ref(inputs, Ws, bs, Wf, bf):
    """Pure-JAX reference matching the PyTorch forward literally."""
    weighted = [inp * (i + 1) for i, inp in enumerate(inputs)]
    concatenated = jnp.concatenate(weighted, axis=1)
    transformed = [concatenated @ W.T + b for W, b in zip(Ws, bs)]
    weighted2 = [t * (l + 1) for l, t in enumerate(transformed)]
    concatenated2 = jnp.concatenate(weighted2, axis=1) @ Wf.T + bf
    return concatenated2 - sum(transformed)


if __name__ == "__main__":
    key = jax.random.PRNGKey(0)
    pkey, xkey = jax.random.split(key)
    Ws, bs, Wf, bf = init_params(pkey)

    # --- small batch (gridless path) ---
    B = 8
    xkeys = jax.random.split(xkey, NUM_INPUTS)
    inputs = [jax.random.normal(xkeys[i], (B, FEATURES), jnp.float32)
              for i in range(NUM_INPUTS)]
    out = jax.block_until_ready(vanilla_forward_pallas(inputs, Ws, bs, Wf, bf))
    ref = vanilla_forward_ref(inputs, Ws, bs, Wf, bf)
    assert out.shape == (B, FEATURES)
    assert jnp.allclose(out, ref, atol=1e-3, rtol=1e-3), "mismatch vs reference (B=8)"

    # --- larger, non-aligned batch (tiled path, exercises padding) ---
    B2 = 600
    xkeys2 = jax.random.split(jax.random.PRNGKey(1), NUM_INPUTS)
    inputs2 = [jax.random.normal(xkeys2[i], (B2, FEATURES), jnp.float32)
               for i in range(NUM_INPUTS)]
    out2 = jax.block_until_ready(vanilla_forward_pallas(inputs2, Ws, bs, Wf, bf))
    ref2 = vanilla_forward_ref(inputs2, Ws, bs, Wf, bf)
    assert out2.shape == (B2, FEATURES)
    assert jnp.allclose(out2, ref2, atol=1e-3, rtol=1e-3), "mismatch vs reference (B=600)"

    print("KERNEL_OK")
</pallas_src>

<mosaic_0001>
module attributes {stable_mosaic.version = 11 : i64} {
  func.func @vanilla_kernel(%arg0: memref<8x128xf32, #tpu.memory_space<vmem>>, %arg1: memref<128x128xf32, #tpu.memory_space<vmem>>, %arg2: memref<1x128xf32, #tpu.memory_space<vmem>>, %arg3: memref<8x128xf32, #tpu.memory_space<vmem>>) attributes {dimension_semantics = [], scalar_prefetch = 0 : i64, scratch_operands = 0 : i64, tpu.core_type = #tpu.core_type<tc>} {
    %c0 = arith.constant 0 : index
    %c0_0 = arith.constant 0 : index
    %0 = vector.load %arg0[%c0, %c0_0] : memref<8x128xf32, #tpu.memory_space<vmem>>, vector<8x128xf32>
    %c0_1 = arith.constant 0 : index
    %c0_2 = arith.constant 0 : index
    %1 = vector.load %arg1[%c0_1, %c0_2] : memref<128x128xf32, #tpu.memory_space<vmem>>, vector<128x128xf32>
    %cst = arith.constant dense<0.000000e+00> : vector<8x128xf32>
    %2 = tpu.matmul %0, %1, %cst {dimension_numbers = #tpu.dot_dimension_numbers<[1], [0], [0], [1], [0, 0, 1, 1], [], []>} : vector<8x128xf32>, vector<128x128xf32>, vector<8x128xf32> -> vector<8x128xf32>
    %c0_3 = arith.constant 0 : index
    %c0_4 = arith.constant 0 : index
    %3 = vector.load %arg2[%c0_3, %c0_4] : memref<1x128xf32, #tpu.memory_space<vmem>>, vector<1x128xf32>
    %4 = vector.broadcast %3 : vector<1x128xf32> to vector<8x128xf32>
    %5 = arith.addf %2, %4 : vector<8x128xf32>
    %c0_5 = arith.constant 0 : index
    %c0_6 = arith.constant 0 : index
    %6 = vector.load %arg3[%c0_5, %c0_6] : memref<8x128xf32, #tpu.memory_space<vmem>>, vector<8x128xf32>
    tpu.vector_store %arg3[%c0_5, %c0_6], %5 {strides = array<i32>} : memref<8x128xf32, #tpu.memory_space<vmem>>, vector<8x128xf32>,
    return
  }
}

</mosaic_0001>

<bundles_post_ra>
// kernel: tpu_custom_call.1
= control target key start
LH: loop header
LB: loop body
LE: loop exit
PB: predicated region body
PF: predicated region fallthrough
CT: control target
= control target key end

     0   :  { %8 = vsyncpa [#allocation3], 0  ;;  %s226_s0 = inlined_call_operand.hbm [shape: f32[8,128], index: 0, kind: input, shape index: {}]   ;;  %s227_s1 = inlined_call_operand.hbm [shape: f32[128,128], index: 1, kind: input, shape index: {}]   ;;  %s228_s2 = inlined_call_operand.vmem [shape: f32[1,128], index: 2, kind: input, shape index: {}]   ;;  %s229_s3 = inlined_call_operand.hbm [shape: f32[8,128], index: 3, kind: output, shape index: {}]  }
   0x1   :  { %9 = vsyncpa [#allocation6], 0 }
   0x2   :  { %10 = vsyncpa [#allocation4], 0  ;;  %s16_s14 = sshll.u32 %s226_s0, 4  ;;  %s189_s15 = smov [#allocation2]   ;;  %s17_s14 = int_to_ptr.hbm [resolvable:$true] %s16_s14 }
   0x3   :  { %s18_s16 = sshll.u32 %s189_s15, 4  ;;  %s26_s19 = sshll.u32 %s227_s1, 4  ;;  %s19_s16 = int_to_ptr.vmem [resolvable:$true] %s18_s16  ;;  %s27_s19 = int_to_ptr.hbm [resolvable:$true] %s26_s19 }
   0x4   :  { %21 = dma.hbm_to_vmem [thread:$0]  %s17_s14, 128, %s19_s16, [#allocation3]  }
   0x5   :  { %s190_s20 = smov [#allocation5]   ;;  %s191_s22 = smov 128  }
   0x6   :  { %s28_s21 = sshll.u32 %s190_s20, 4  ;;  %s192_s23 = smov 8   ;;  %s29_s21 = int_to_ptr.vmem [resolvable:$true] %s28_s21 }
   0x7   :  { %34 = dma.hbm_to_vmem [thread:$0]  %s27_s19, 2048, %s29_s21, [#allocation6], %s191_s22, %s191_s22, %s192_s23  }
   0x8   :  { %183 = dma.done.wait [#allocation3], 128  }
   0x9   :  { %184 = vsyncadd [#allocation3], 4294967168 }
   0xa   :  { %185 = dma.done.wait [#allocation6], 2048  }
   0xb   :  { %186 = vsyncadd [#allocation6], 4294965248  ;;  %v61_v0 = vld [vmem:[#allocation5 + $0x78] sm:$0xff]  ;;  %v60_v1 = vld [vmem:[#allocation5 + $0x70] sm:$0xff]  ;;  %s193_s24 = smov [#allocation7]   ;;  %s94_s28 = sshll.u32 %s229_s3, 4  ;;  %s95_s28 = int_to_ptr.hbm [resolvable:$true] %s94_s28 }
   0xc   :  { %66 = vmatpush.msra.mxu0 %v61_v0  ;;  %v59_v2 = vld [vmem:[#allocation5 + $0x68] sm:$0xff]  ;;  %v58_v3 = vld [vmem:[#allocation5 + $0x60] sm:$0xff]  ;;  %v57_v4 = vld [vmem:[#allocation5 + $0x58] sm:$0xff]  ;;  %s92_s25 = sshll.u32 %s193_s24, 4  ;;  %s93_s25 = int_to_ptr.vmem [resolvable:$true] %s92_s25 }
   0xd   :  { %v56_v5 = vld [vmem:[#allocation5 + $0x50] sm:$0xff]  ;;  %v55_v6 = vld [vmem:[#allocation5 + $0x48] sm:$0xff]  ;;  %v54_v7 = vld [vmem:[#allocation5 + $0x40] sm:$0xff] }
   0xe   :  { %67 = vmatpush.msra.mxu0 %v60_v1  ;;  %v53_v8 = vld [vmem:[#allocation5 + $0x38] sm:$0xff]  ;;  %v52_v9 = vld [vmem:[#allocation5 + $0x30] sm:$0xff]  ;;  %v51_v10 = vld [vmem:[#allocation5 + $0x28] sm:$0xff] }
   0xf   :  { %v50_v11 = vld [vmem:[#allocation5 + $0x20] sm:$0xff]  ;;  %v49_v12 = vld [vmem:[#allocation5 + $0x18] sm:$0xff]  ;;  %v48_v13 = vld [vmem:[#allocation5 + $0x10] sm:$0xff] }
  0x10   :  { %68 = vmatpush.msra.mxu0 %v59_v2  ;;  %v47_v14 = vld [vmem:[#allocation5 + $0x8] sm:$0xff]  ;;  %v46_v15 = vld [vmem:[#allocation5] sm:$0xff]  ;;  %v45_v16 = vld [vmem:[#allocation2] sm:$0xff] }
  0x11   :  { %v110_v17 = vld [vmem:[%s228_s2] ss:$0 sm:$0xff] }
  0x12   :  { %69 = vmatpush.msra.mxu0 %v58_v3 }
  0x14   :  { %70 = vmatpush.msra.mxu0 %v57_v4 }
  0x16   :  { %71 = vmatpush.msra.mxu0 %v56_v5 }
  0x18   :  { %72 = vmatpush.msra.mxu0 %v55_v6 }
  0x1a   :  { %73 = vmatpush.msra.mxu0 %v54_v7 }
  0x1c   :  { %74 = vmatpush.msra.mxu0 %v53_v8 }
  0x1e   :  { %75 = vmatpush.msra.mxu0 %v52_v9 }
  0x20   :  { %76 = vmatpush.msra.mxu0 %v51_v10 }
  0x22   :  { %77 = vmatpush.msra.mxu0 %v50_v11 }
  0x24   :  { %78 = vmatpush.msra.mxu0 %v49_v12 }
  0x26   :  { %79 = vmatpush.msra.mxu0 %v48_v13 }
  0x28   :  { %80 = vmatpush.msra.mxu0 %v47_v14 }
  0x2a   :  { %81 = vmatpush.msra.mxu0 %v46_v15 }
  0x2b   :  { %82 = vmatmul.f32.vlgmr.msra.gmra.mxu0 %v45_v16 }
  0xa8   :  { %v83_v18 = vpop.f32.mrf.mxu0 }
  0xa9   :  { %v84_v19 = vadd.f32 %v110_v17, %v83_v18 }
  0xab   :  { %86 = vst [vmem:[#allocation7] sm:$0xff] %v84_v19 }
  0xac   :  { %97 = dma.vmem_to_hbm [thread:$0]  %s93_s25, 128, %s95_s28, [#allocation4]  }
  0xad   :  { %187 = dma.done.wait [#allocation4], 128  }
  0xae   :  { %188 = vsyncadd [#allocation4], 4294967168 }
  0xaf   :  { %102 = vsyncpa [#allocation3], 1 }
  0xb0   :  { %103 = vsyncpa [#allocation6], 1 }
  0xb1   :  { %104 = vsyncpa [#allocation4], 1 }

</bundles_post_ra>
